<compile_context>
chip_gen: v7x
topology: tpu7x:2x2x1
jax: 0.10.0
libtpu: 0.0.40
codegen_flags: <defaults>
</compile_context>

<pallas_src>
import functools

import jax
import jax.numpy as jnp
from jax.experimental import pallas as pl
from jax.experimental.pallas import tpu as pltpu


# ---------------------------------------------------------------- kernels ---

def _pool_gate_kernel(x_ref, w1t_ref, b1c_ref, w2t_ref, b2c_ref, gate_ref,
                      *, hw, thw, inv_hw):
    """Pass A: per-channel spatial-sum accumulation + gate-MLP epilogue.

    x_ref:    (1, C, thw) input tile (tail tile may be partial).
    w1t_ref:  (hidden, C) f32   reduce weight, transposed.
    b1c_ref:  (hidden, 1) f32
    w2t_ref:  (C, hidden) f32   expand weight, transposed.
    b2c_ref:  (C, 1)      f32
    gate_ref: (1, C, 1)   f32   resident output: running sum, then final gate.
    """
    t = pl.program_id(1)
    last = pl.num_programs(1) - 1
    rem = hw % thw                                   # static Python int

    @pl.when(t == 0)
    def _():
        gate_ref[...] = jnp.zeros_like(gate_ref)

    def _acc_full():
        x = x_ref[0].astype(jnp.float32)                              # (C, thw)
        gate_ref[...] += jnp.sum(x, axis=-1, keepdims=True)[None]     # (1, C, 1)

    if rem == 0:
        _acc_full()
    else:
        @pl.when(t != last)
        def _():
            _acc_full()

        @pl.when(t == last)
        def _():
            # Exact static slice of the valid tail region: no masking temps,
            # no garbage in the sum.
            xt = x_ref[0, :, :rem].astype(jnp.float32)                # (C, rem)
            gate_ref[...] += jnp.sum(xt, axis=-1, keepdims=True)[None]

    @pl.when(t == last)
    def _():
        pooled = gate_ref[0] * inv_hw                                 # (C, 1)
        h = jnp.dot(w1t_ref[...], pooled,
                    preferred_element_type=jnp.float32) + b1c_ref[...]
        h = h * jax.nn.sigmoid(h)                                     # Swish
        s = jnp.dot(w2t_ref[...], h,
                    preferred_element_type=jnp.float32) + b2c_ref[...]
        s = s * jax.nn.sigmoid(s)                                     # Swish
        gate_ref[...] = jax.nn.sigmoid(s)[None]                       # (1, C, 1)


def _scale_kernel(x_ref, gate_ref, o_ref):
    """Pass B: out = x * gate; gate (C, 1) broadcast over the lane (HW) axis.
    Multiply runs in the input dtype (native bf16 on v6e/v7x)."""
    x = x_ref[0]                                   # (C, thw), input dtype
    g = gate_ref[0].astype(x.dtype)                # (C, 1)
    o_ref[0] = (x * g).astype(o_ref.dtype)


def _fused_kernel(x_ref, w1t_ref, b1c_ref, w2t_ref, b2c_ref, o_ref, *, inv_hw):
    """Single-read path: pool + gate MLP + scale on one resident sample slice."""
    x = x_ref[0]                                                      # (C, HW)
    pooled = jnp.sum(x.astype(jnp.float32), axis=-1,
                     keepdims=True) * inv_hw                          # (C, 1)
    h = jnp.dot(w1t_ref[...], pooled,
                preferred_element_type=jnp.float32) + b1c_ref[...]
    h = h * jax.nn.sigmoid(h)                                         # Swish
    s = jnp.dot(w2t_ref[...], h,
                preferred_element_type=jnp.float32) + b2c_ref[...]
    s = s * jax.nn.sigmoid(s)                                         # Swish
    g = jax.nn.sigmoid(s).astype(x.dtype)                             # (C, 1)
    o_ref[0] = (x * g).astype(o_ref.dtype)


# ---------------------------------------------------------------- sizing ----

def _physical_vmem_bytes():
    """Physical VMEM per TensorCore; conservative 64 MiB (v7x) fallback."""
    try:
        info = pltpu.get_tpu_info()
        for name in ("vmem_capacity_bytes", "vmem_size_bytes", "vmem_bytes"):
            v = getattr(info, name, None)
            if v:
                return int(v)
    except Exception:
        pass
    return 64 << 20


def _choose_hw_tile(hw, c, itemsize, max_block_bytes):
    """Largest 128-multiple lane tile whose (C, tile) block fits the budget;
    full HW if the whole row already fits.  The grid uses cdiv, so the tile
    need NOT divide HW (tail handled in-kernel / by Pallas boundary clipping)."""
    if c * hw * itemsize <= max_block_bytes:
        return hw
    tile = (max_block_bytes // (c * itemsize)) // 128 * 128
    tile = max(128, tile)
    return hw if tile >= hw else tile


# ---------------------------------------------------------------- wrapper ---

def squeeze_excitation_2d(x_nchw, w_reduce, b_reduce, w_expand, b_expand, *,
                          max_block_bytes=None, fused_max_bytes=None,
                          donate_x=False):
    """x_nchw: (N, C, H, W). Returns (N, C, H, W) with x's dtype."""
    N, C, H, W = x_nchw.shape
    hidden = w_reduce.shape[1]
    HW = H * W
    inv_hw = 1.0 / float(HW)
    itemsize = x_nchw.dtype.itemsize

    # Generation-aware budgets (v5e/v6e: 128 MiB VMEM; v7x: 64 MiB per core).
    vmem_phys = _physical_vmem_bytes()
    big_vmem = vmem_phys >= (96 << 20)
    if max_block_bytes is None:
        max_block_bytes = (8 << 20) if big_vmem else (4 << 20)
    if fused_max_bytes is None:
        fused_max_bytes = (10 << 20) if big_vmem else (4 << 20)
    vmem_cap = (96 << 20) if big_vmem else (44 << 20)

    # NCHW -> (N, C, HW): contiguous-dim merge, no data movement.
    x3 = x_nchw.reshape(N, C, HW)

    # Column-vector weight layout (channels stay on the sublane axis, so no
    # (1,C)<->(C,1) relayout is ever needed inside the kernels).
    w1t = jnp.asarray(w_reduce, jnp.float32).T                # (hidden, C)
    b1c = jnp.asarray(b_reduce, jnp.float32).reshape(hidden, 1)
    w2t = jnp.asarray(w_expand, jnp.float32).T                # (C, hidden)
    b2c = jnp.asarray(b_expand, jnp.float32).reshape(C, 1)

    aliases = {0: 0} if donate_x else {}

    # ---- Fused single-read path: sample slice resident in VMEM --------------
    slice_bytes = C * HW * itemsize
    if slice_bytes <= fused_max_bytes:
        vmem_limit = int(min(vmem_cap,
                             max(16 << 20, 8 * slice_bytes + (2 << 20))))
        out3 = pl.pallas_call(
            functools.partial(_fused_kernel, inv_hw=inv_hw),
            out_shape=jax.ShapeDtypeStruct((N, C, HW), x_nchw.dtype),
            grid_spec=pltpu.PrefetchScalarGridSpec(
                num_scalar_prefetch=0,
                grid=(N,),
                in_specs=[
                    pl.BlockSpec((1, C, HW), lambda n: (n, 0, 0)),
                    pl.BlockSpec((hidden, C), lambda n: (0, 0)),
                    pl.BlockSpec((hidden, 1), lambda n: (0, 0)),
                    pl.BlockSpec((C, hidden), lambda n: (0, 0)),
                    pl.BlockSpec((C, 1), lambda n: (0, 0)),
                ],
                out_specs=pl.BlockSpec((1, C, HW), lambda n: (n, 0, 0)),
            ),
            compiler_params=pltpu.CompilerParams(
                dimension_semantics=("parallel",),
                vmem_limit_bytes=vmem_limit),
            input_output_aliases=aliases,
        )(x3, w1t, b1c, w2t, b2c)
        return out3.reshape(N, C, H, W)

    # ---- Two-pass tiled path -------------------------------------------------
    thw = _choose_hw_tile(HW, C, itemsize, max_block_bytes)
    n_hw = pl.cdiv(HW, thw)
    block_bytes = C * thw * itemsize
    vmem_limit = int(min(vmem_cap, max(16 << 20, 6 * block_bytes + (2 << 20))))

    # Pass A: pooled sums with gate-MLP epilogue -> (N, C, 1) f32 gate.
    gate = pl.pallas_call(
        functools.partial(_pool_gate_kernel, hw=HW, thw=thw, inv_hw=inv_hw),
        out_shape=jax.ShapeDtypeStruct((N, C, 1), jnp.float32),
        grid_spec=pltpu.PrefetchScalarGridSpec(
            num_scalar_prefetch=0,
            grid=(N, n_hw),
            in_specs=[
                pl.BlockSpec((1, C, thw), lambda n, t: (n, 0, t)),
                pl.BlockSpec((hidden, C), lambda n, t: (0, 0)),
                pl.BlockSpec((hidden, 1), lambda n, t: (0, 0)),
                pl.BlockSpec((C, hidden), lambda n, t: (0, 0)),
                pl.BlockSpec((C, 1), lambda n, t: (0, 0)),
            ],
            out_specs=pl.BlockSpec((1, C, 1), lambda n, t: (n, 0, 0)),
        ),
        compiler_params=pltpu.CompilerParams(
            dimension_semantics=("parallel", "arbitrary"),
            vmem_limit_bytes=vmem_limit),
    )(x3, w1t, b1c, w2t, b2c)

    # Pass B: elementwise gate-multiply, tiled over (N, HW).
    out3 = pl.pallas_call(
        _scale_kernel,
        out_shape=jax.ShapeDtypeStruct((N, C, HW), x_nchw.dtype),
        grid_spec=pltpu.PrefetchScalarGridSpec(
            num_scalar_prefetch=0,
            grid=(N, n_hw),
            in_specs=[
                pl.BlockSpec((1, C, thw), lambda n, t: (n, 0, t)),
                pl.BlockSpec((1, C, 1), lambda n, t: (n, 0, 0)),
            ],
            out_specs=pl.BlockSpec((1, C, thw), lambda n, t: (n, 0, t)),
        ),
        compiler_params=pltpu.CompilerParams(
            dimension_semantics=("parallel", "parallel"),
            vmem_limit_bytes=vmem_limit),
        input_output_aliases=aliases,
    )(x3, gate)

    return out3.reshape(N, C, H, W)


# -------------------------------------------------------------- reference ---

def _reference(x_nchw, w_reduce, b_reduce, w_expand, b_expand):
    """Pure-JAX mirror of the PyTorch forward."""
    pooled = jnp.mean(x_nchw.astype(jnp.float32), axis=(2, 3))     # (N, C)
    h = pooled @ w_reduce.astype(jnp.float32) + b_reduce.reshape(1, -1)
    h = h * jax.nn.sigmoid(h)
    s = h @ w_expand.astype(jnp.float32) + b_expand.reshape(1, -1)
    s = s * jax.nn.sigmoid(s)
    gate = jax.nn.sigmoid(s)[:, :, None, None]
    return (gate * x_nchw.astype(jnp.float32)).astype(x_nchw.dtype)


if __name__ == "__main__":
    def make_inputs(key, N, C, H, W, hidden, dtype=jnp.float32):
        kx, kw1, kb1, kw2, kb2 = jax.random.split(key, 5)
        x = jax.random.normal(kx, (N, C, H, W), dtype=dtype)
        w1 = jax.random.normal(kw1, (C, hidden), jnp.float32) * 0.1
        b1 = jax.random.normal(kb1, (1, hidden), jnp.float32) * 0.1
        w2 = jax.random.normal(kw2, (hidden, C), jnp.float32) * 0.1
        b2 = jax.random.normal(kb2, (1, C), jnp.float32) * 0.1
        return x, w1, b1, w2, b2

    # Test 1: small module-consistent shape -> fused single-read path.
    args1 = make_inputs(jax.random.PRNGKey(0), 2, 4, 16, 16, 8)
    out1 = jax.block_until_ready(jax.jit(squeeze_excitation_2d)(*args1))
    ref1 = _reference(*args1)
    assert out1.shape == args1[0].shape and out1.dtype == args1[0].dtype
    assert jnp.allclose(out1, ref1, atol=1e-5, rtol=1e-5), "mismatch (test 1)"

    # Test 2: force the tiled two-pass path with HW an exact multiple of the
    # tile (multi-step pooled accumulation + fused gate epilogue).
    args2 = make_inputs(jax.random.PRNGKey(1), 1, 16, 32, 32, 8)
    fn2 = jax.jit(functools.partial(squeeze_excitation_2d,
                                    fused_max_bytes=0,
                                    max_block_bytes=16 * 1024))
    out2 = jax.block_until_ready(fn2(*args2))
    assert jnp.allclose(out2, _reference(*args2), atol=1e-4, rtol=1e-4), \
        "mismatch (test 2)"

    # Test 3: tiled path with a ragged tail (HW=196 is not a multiple of 128):
    # exercises the static tail slice in the pool pass and the clipped tail
    # store in the scale pass.
    args3 = make_inputs(jax.random.PRNGKey(2), 2, 8, 14, 14, 8)
    fn3 = jax.jit(functools.partial(squeeze_excitation_2d,
                                    fused_max_bytes=0,
                                    max_block_bytes=4 * 1024))
    out3 = jax.block_until_ready(fn3(*args3))
    assert jnp.allclose(out3, _reference(*args3), atol=1e-4, rtol=1e-4), \
        "mismatch (test 3)"

    print("KERNEL_OK")
</pallas_src>

<mosaic_0001>
module attributes {stable_mosaic.version = 11 : i64} {
  func.func @_fused_kernel(%arg0: i32, %arg1: memref<1x4x256xf32, #tpu.memory_space<vmem>>, %arg2: memref<8x4xf32, #tpu.memory_space<vmem>>, %arg3: memref<8x1xf32, #tpu.memory_space<vmem>>, %arg4: memref<4x8xf32, #tpu.memory_space<vmem>>, %arg5: memref<4x1xf32, #tpu.memory_space<vmem>>, %arg6: memref<1x4x256xf32, #tpu.memory_space<vmem>>) attributes {dimension_semantics = [#tpu.dimension_semantics<parallel>], iteration_bounds = array<i64: 2>, scalar_prefetch = 0 : i64, scratch_operands = 0 : i64, tpu.core_type = #tpu.core_type<tc>, window_params = [{transform_indices = @transform_0, window_bounds = array<i64: 1, 4, 256>}, {pipeline_mode = #tpu.pipeline_mode<synchronous>, transform_indices = @transform_1, window_bounds = array<i64: 8, 4>}, {pipeline_mode = #tpu.pipeline_mode<synchronous>, transform_indices = @transform_2, window_bounds = array<i64: 8, 1>}, {pipeline_mode = #tpu.pipeline_mode<synchronous>, transform_indices = @transform_3, window_bounds = array<i64: 4, 8>}, {pipeline_mode = #tpu.pipeline_mode<synchronous>, transform_indices = @transform_4, window_bounds = array<i64: 4, 1>}, {transform_indices = @transform_5, window_bounds = array<i64: 1, 4, 256>}]} {
    %c0 = arith.constant 0 : index
    %c0_0 = arith.constant 0 : index
    %c0_1 = arith.constant 0 : index
    %0 = vector.load %arg1[%c0, %c0_0, %c0_1] : memref<1x4x256xf32, #tpu.memory_space<vmem>>, vector<1x4x256xf32>
    %1 = vector.shape_cast %0 : vector<1x4x256xf32> to vector<4x256xf32>
    %cst = arith.constant dense<0.000000e+00> : vector<4xf32>
    %2 = vector.multi_reduction <add>, %1, %cst [1] : vector<4x256xf32> to vector<4xf32>
    %3 = vector.shape_cast %2 : vector<4xf32> to vector<4x1xf32>
    %cst_2 = arith.constant 3.906250e-03 : f32
    %4 = vector.broadcast %cst_2 : f32 to vector<4x1xf32>
    %5 = arith.mulf %3, %4 : vector<4x1xf32>
    %c0_3 = arith.constant 0 : index
    %c0_4 = arith.constant 0 : index
    %6 = vector.load %arg2[%c0_3, %c0_4] : memref<8x4xf32, #tpu.memory_space<vmem>>, vector<8x4xf32>
    %cst_5 = arith.constant dense<0.000000e+00> : vector<8x1xf32>
    %7 = tpu.matmul %6, %5, %cst_5 {dimension_numbers = #tpu.dot_dimension_numbers<[1], [0], [0], [1], [0, 0, 1, 1], [], []>} : vector<8x4xf32>, vector<4x1xf32>, vector<8x1xf32> -> vector<8x1xf32>
    %c0_6 = arith.constant 0 : index
    %c0_7 = arith.constant 0 : index
    %8 = vector.load %arg3[%c0_6, %c0_7] : memref<8x1xf32, #tpu.memory_space<vmem>>, vector<8x1xf32>
    %9 = arith.addf %7, %8 : vector<8x1xf32>
    %10 = arith.negf %9 : vector<8x1xf32>
    %11 = math.exp %10 : vector<8x1xf32>
    %cst_8 = arith.constant 1.000000e+00 : f32
    %12 = vector.broadcast %cst_8 : f32 to vector<8x1xf32>
    %13 = arith.addf %12, %11 : vector<8x1xf32>
    %14 = arith.divf %12, %13 : vector<8x1xf32>
    %15 = arith.mulf %9, %14 : vector<8x1xf32>
    %c0_9 = arith.constant 0 : index
    %c0_10 = arith.constant 0 : index
    %16 = vector.load %arg4[%c0_9, %c0_10] : memref<4x8xf32, #tpu.memory_space<vmem>>, vector<4x8xf32>
    %cst_11 = arith.constant dense<0.000000e+00> : vector<4x1xf32>
    %17 = tpu.matmul %16, %15, %cst_11 {dimension_numbers = #tpu.dot_dimension_numbers<[1], [0], [0], [1], [0, 0, 1, 1], [], []>} : vector<4x8xf32>, vector<8x1xf32>, vector<4x1xf32> -> vector<4x1xf32>
    %c0_12 = arith.constant 0 : index
    %c0_13 = arith.constant 0 : index
    %18 = vector.load %arg5[%c0_12, %c0_13] : memref<4x1xf32, #tpu.memory_space<vmem>>, vector<4x1xf32>
    %19 = arith.addf %17, %18 : vector<4x1xf32>
    %20 = arith.negf %19 : vector<4x1xf32>
    %21 = math.exp %20 : vector<4x1xf32>
    %cst_14 = arith.constant 1.000000e+00 : f32
    %22 = vector.broadcast %cst_14 : f32 to vector<4x1xf32>
    %23 = arith.addf %22, %21 : vector<4x1xf32>
    %24 = arith.divf %22, %23 : vector<4x1xf32>
    %25 = arith.mulf %19, %24 : vector<4x1xf32>
    %26 = arith.negf %25 : vector<4x1xf32>
    %27 = math.exp %26 : vector<4x1xf32>
    %cst_15 = arith.constant 1.000000e+00 : f32
    %28 = vector.broadcast %cst_15 : f32 to vector<4x1xf32>
    %29 = arith.addf %28, %27 : vector<4x1xf32>
    %30 = arith.divf %28, %29 : vector<4x1xf32>
    %31 = vector.broadcast %30 : vector<4x1xf32> to vector<4x256xf32>
    %32 = arith.mulf %1, %31 : vector<4x256xf32>
    %c0_16 = arith.constant 0 : index
    %c0_17 = arith.constant 0 : index
    %c0_18 = arith.constant 0 : index
    %33 = vector.load %arg6[%c0_16, %c0_17, %c0_18] : memref<1x4x256xf32, #tpu.memory_space<vmem>>, vector<1x4x256xf32>
    %34 = vector.shape_cast %33 : vector<1x4x256xf32> to vector<4x256xf32>
    %35 = vector.shape_cast %32 : vector<4x256xf32> to vector<1x4x256xf32>
    tpu.vector_store %arg6[%c0_16, %c0_17, %c0_18], %35 {strides = array<i32>} : memref<1x4x256xf32, #tpu.memory_space<vmem>>, vector<1x4x256xf32>,
    return
  }
  func.func @transform_0(%arg0: i32) -> (i32, i32, i32) {
    %c0_i32 = arith.constant 0 : i32
    %c0_i32_0 = arith.constant 0 : i32
    %c0_i32_1 = arith.constant 0 : i32
    return %arg0, %c0_i32, %c0_i32_0 : i32, i32, i32
  }
  func.func @transform_1(%arg0: i32) -> (i32, i32) {
    %c0_i32 = arith.constant 0 : i32
    %c0_i32_0 = arith.constant 0 : i32
    %c0_i32_1 = arith.constant 0 : i32
    return %c0_i32, %c0_i32_0 : i32, i32
  }
  func.func @transform_2(%arg0: i32) -> (i32, i32) {
    %c0_i32 = arith.constant 0 : i32
    %c0_i32_0 = arith.constant 0 : i32
    %c0_i32_1 = arith.constant 0 : i32
    return %c0_i32, %c0_i32_0 : i32, i32
  }
  func.func @transform_3(%arg0: i32) -> (i32, i32) {
    %c0_i32 = arith.constant 0 : i32
    %c0_i32_0 = arith.constant 0 : i32
    %c0_i32_1 = arith.constant 0 : i32
    return %c0_i32, %c0_i32_0 : i32, i32
  }
  func.func @transform_4(%arg0: i32) -> (i32, i32) {
    %c0_i32 = arith.constant 0 : i32
    %c0_i32_0 = arith.constant 0 : i32
    %c0_i32_1 = arith.constant 0 : i32
    return %c0_i32, %c0_i32_0 : i32, i32
  }
  func.func @transform_5(%arg0: i32) -> (i32, i32, i32) {
    %c0_i32 = arith.constant 0 : i32
    %c0_i32_0 = arith.constant 0 : i32
    %c0_i32_1 = arith.constant 0 : i32
    return %arg0, %c0_i32, %c0_i32_0 : i32, i32, i32
  }
}

</mosaic_0001>

<bundles_post_ra>
// kernel: squeeze_excitation_2d.1
= control target key start
LH: loop header
LB: loop body
LE: loop exit
PB: predicated region body
PF: predicated region fallthrough
CT: control target
= control target key end

     0   :  { %s581_s18 = smov 0   ;;  %s620_s0 = inlined_call_operand.vmem [shape: f32[2,4,256], index: 0, kind: input, shape index: {}]   ;;  %s621_s1 = inlined_call_operand.vmem [shape: f32[8,4], index: 1, kind: input, shape index: {}]   ;;  %s622_s2 = inlined_call_operand.vmem [shape: f32[8,1], index: 2, kind: input, shape index: {}]   ;;  %s623_s3 = inlined_call_operand.vmem [shape: f32[4,8], index: 3, kind: input, shape index: {}]   ;;  %s624_s4 = inlined_call_operand.vmem [shape: f32[4,1], index: 4, kind: input, shape index: {}]   ;;  %s625_s5 = inlined_call_operand.vmem [shape: f32[2,4,256], index: 5, kind: output, shape index: {}]  }
   0x1 LB: > { %s480_s19 = sadd.s32 4294967295, %s545_s18   ;;  %p484_p0 = scmp.ge.s32.totalorder %s545_s18, 1  ;;  %s545_s18 = sphi %s581_s18, %s15_s18  }
   0x2   : > { %p187_p1 = scmp.lt.s32.totalorder %s545_s18, 3 }
   0x4   : > { %p188_p2 = pnand %p484_p0, %p187_p1 }
   0x5   : > { %p215_p3 = scmp.lt.s32.totalorder (!%p188_p2), %s480_s19, 1  ;;  %vm229_vm0 = vcmask (!%p188_p2), 1043456   ;;  %v547_v5 = vmov (!%p188_p2), 0.0   ;;  %vm548_vm1 = vmmov (!%p188_p2), 0   ;;  %v236_v8 = vld [vmem:[%s621_s1] sm:$0xff] (!%p188_p2)  ;;  %vm238_vm2 = vcmask (!%p188_p2), 31744  }
   0x6   : > { %191 = sbr.rel (%p188_p2) target bundleno = 811 (0x32b), region = 40  ;;  %503 = vmatprep.subr.mxu0 (!%p188_p2), %v547_v5  ;;  %508 = vmatprep.subr.mxu1 (!%p188_p2), %v547_v5  ;;  %v237_v9 = vld [vmem:[%s622_s2] sm:$0xff] (!%p188_p2)  ;;  %vm324_vm3 = vcmask (!%p188_p2), 64512   ;;  %v549_v19 = vmov (!%p188_p2), 0   ;;  %v550_v33 = vmov (!%p188_p2), 839922192   ;;  %v418_v35 = vlaneseq (!%p188_p2) }
   0x7   : > { %505 = vmatprep.mubr.msk.f32.mxu0 (!%p188_p2), %vm548_vm1, %v547_v5  ;;  %510 = vmatprep.mubr.msk.f32.mxu1 (!%p188_p2), %vm548_vm1, %v547_v5  ;;  %v322_v18 = vld [vmem:[%s623_s3] sm:$0xf] (!%p188_p2)  ;;  %v416_v34 = vunpack.c.l.s4 (!%p188_p2), %v550_v33 }
   0x8   : > { %525 = vset.pattern.permute.xlu0 (!%p188_p2), %v549_v19  ;;  %v323_v20 = vld [vmem:[%s624_s4] sm:$0xf] (!%p188_p2)  ;;  %v419_v37 = vshrl.u32 (!%p188_p2), %v418_v35, 7 }
   0x9   : > { %v417_v36 = vunpack.c.0.s8 (!%p188_p2), %v416_v34 }
   0xb   : > { %v420_v38 = vsub.s32 (!%p188_p2), %v417_v36, %v419_v37 }
   0xd   : > { %s627_s19 = smov (!%p215_p3, %s480_s19), 1 }
   0xe   : > { %s497_s20 = sshll.u32 %s627_s19, 3 }
   0xf   : > { %s219_s23 = scalar_lea.vmem %s620_s0, %s497_s20  ;;  %s224_s9 = scalar_lea.vmem %s625_s5, %s497_s20 }
  0x10   : > { %v225_v0 = vld [vmem:[%s219_s23] sm:$0xff] }
  0x11   : > { %v227_v1 = vcombine.high %v225_v0, %v225_v0  ;;  %v230_v2 = vsel %vm229_vm0, %v225_v0, 0.0 }
  0x13   : > { %v231_v3 = vsel %vm229_vm0, %v227_v1, 0.0 }
  0x14   : > { %v232_v4 = vadd.f32 %v231_v3, %v230_v2 }
  0x16   : > { %233 = vadd.xlane.f32.xlu0 %v232_v4 }
  0xa3   : > { %v234_v6 = vpop.xlane.xlu0 %233 }
  0xa4   : > { %v235_v7 = vmul.f32 0.00390625, %v234_v6 }
  0xa6   : > { %504 = vmatpush3.msk.msra.mxu0 %vm229_vm0, %v235_v7 }
  0xa7   : > { %506 = vmatmul.mubr.msk.f32.vlgmr.msra.gmra.mrb[0].mxu0 %vm238_vm2, %v236_v8 }
 0x17a   : > { %v311_v10 = vpop.f32.mrb[0].mxu0 }
 0x17b   : > { %v312_v11 = vadd.f32 %v311_v10, %v237_v9  ;;  %v507_v12 = vpop.f32.mrb[1].mxu0 }
 0x17d   : > { %v491_v13 = vmul.f32 -1.442695, %v312_v11 }
 0x17f   : > { %527 = vpow2.f32 %v491_v13 }
 0x189   : > { %v528_v14 = vpop.eup %527 }
 0x18a   : > { %v318_v15 = vadd.f32 1.0, %v528_v14 }
 0x18c   : > { %529 = vrcp.f32 %v318_v15 }
 0x196   : > { %v530_v16 = vpop.eup %529 }
 0x197   : > { %v321_v17 = vmul.f32 %v530_v16, %v312_v11 }
 0x199   : > { %509 = vmatpush3.msra.mxu1 %v321_v17 }
 0x19a   : > { %511 = vmatmul.mubr.msk.f32.vlgmr.msra.gmra.mrb[0].mxu1 %vm324_vm3, %v322_v18 }
 0x26d   : > { %v394_v21 = vpop.f32.mrb[0].mxu1 }
 0x26e   : > { %v395_v22 = vadd.f32 %v394_v21, %v323_v20  ;;  %v512_v23 = vpop.f32.mrb[1].mxu1 }
 0x270   : > { %v493_v24 = vmul.f32 -1.442695, %v395_v22 }
 0x272   : > { %531 = vpow2.f32 %v493_v24 }
 0x27c   : > { %v532_v25 = vpop.eup %531 }
 0x27d   : > { %v401_v26 = vadd.f32 1.0, %v532_v25 }
 0x27f   : > { %533 = vrcp.f32 %v401_v26 }
 0x289   : > { %v534_v27 = vpop.eup %533 }
 0x28a   : > { %v404_v28 = vmul.f32 %v534_v27, %v395_v22 }
 0x28c   : > { %v494_v29 = vmul.f32 -1.442695, %v404_v28 }
 0x28e   : > { %535 = vpow2.f32 %v494_v29 }
 0x298   : > { %v536_v30 = vpop.eup %535 }
 0x299   : > { %v408_v31 = vadd.f32 1.0, %v536_v30 }
 0x29b   : > { %537 = vrcp.f32 %v408_v31 }
 0x2a5   : > { %v538_v32 = vpop.eup %537 }
 0x2a6   : > { %413 = vperm.xlu0 %525, %v538_v32  }
 0x325   : > { %v414_v39 = vpop.permute.xlu0 %413 }
 0x326   : > { %v421_v40 = vrot.slane %v414_v39, %v420_v38 }
 0x328   : > { %v423_v41 = vmul.f32 %v421_v40, %v225_v0 }
 0x32a   : > { %424 = vst [vmem:[%s224_s9] sm:$0xff] %v423_v41 }
 0x32b PF: > { %s15_s18 = sadd.s32 1, %s545_s18  }
 0x32c   : > { %p12_p4 = scmp.ge.s32.totalorder %s15_s18, 4  }
 0x32e   :  { %14 = sbr.rel (!%p12_p4) target bundleno = 1 (0x1), region = 70 }

</bundles_post_ra>
